<compile_context>
chip_gen: v6e
topology: v6e:2x2x1
jax: 0.10.0
libtpu: 0.0.40
codegen_flags: <defaults>
</compile_context>

<pallas_src>
import functools

import jax
import jax.numpy as jnp
from jax.experimental import pallas as pl
from jax.experimental.pallas import tpu as pltpu


def _round_up(x: int, m: int) -> int:
    return (x + m - 1) // m * m


# -----------------------------------------------------------------------------
# Kernels
# -----------------------------------------------------------------------------
def _ffn_kernel_resident(x_ref, w1_ref, b1_ref, w2_ref, b2_ref, o_ref):
    """Whole-d_ff step: weights are VMEM-resident, no accumulator scratch."""
    h = jnp.dot(x_ref[...], w1_ref[...], preferred_element_type=jnp.float32)
    h = jnp.maximum(h + b1_ref[...].astype(jnp.float32), 0.0)
    # Dropout in eval/inference mode == identity (no-op).
    o = jnp.dot(h.astype(w2_ref.dtype), w2_ref[...],
                preferred_element_type=jnp.float32)
    o_ref[...] = (o + b2_ref[...].astype(jnp.float32)).astype(o_ref.dtype)


def _ffn_kernel_tiled(x_ref, w1_ref, b1_ref, w2_ref, b2_ref, o_ref, acc_ref):
    """One (row-tile, d_ff-tile) step:

    acc += relu(x @ W1[:, k] + b1[k]) @ W2[k, :]
    zeroed at k == 0, finalized (+ b2, cast) at the last k step.
    """
    k = pl.program_id(1)

    @pl.when(k == 0)
    def _():
        acc_ref[...] = jnp.zeros_like(acc_ref)

    h = jnp.dot(x_ref[...], w1_ref[...], preferred_element_type=jnp.float32)
    h = jnp.maximum(h + b1_ref[...].astype(jnp.float32), 0.0)
    # Dropout in eval/inference mode == identity (no-op).
    acc_ref[...] += jnp.dot(
        h.astype(w2_ref.dtype), w2_ref[...], preferred_element_type=jnp.float32
    )

    @pl.when(k == pl.num_programs(1) - 1)
    def _():
        o_ref[...] = (acc_ref[...] + b2_ref[...].astype(jnp.float32)).astype(
            o_ref.dtype
        )


# -----------------------------------------------------------------------------
# Tile / VMEM selection helpers
# -----------------------------------------------------------------------------
def _tpu_vmem_info():
    """Returns (physical VMEM bytes per core, is_v5e). Conservative fallback."""
    vmem_cap = 64 << 20  # v7x per-TensorCore VMEM; safe lower bound everywhere
    is_v5e = False
    try:
        info = pltpu.get_tpu_info()
        vmem_cap = int(info.vmem_capacity_bytes)
        name = str(getattr(info, "chip_version", "")).lower()
        is_v5e = ("v5e" in name) or ("5lite" in name) or ("v5 lite" in name)
    except Exception:
        pass
    return vmem_cap, is_v5e


def _footprint_bytes(tm, tf, d_model, x_isz, w_isz, resident):
    """Estimated VMEM footprint of one kernel configuration (double-buffered
    tiles + materialized h temporaries + f32 accumulator when tiled)."""
    buf = (
        2 * tm * d_model * x_isz        # x tile, double-buffered
        + 2 * tm * d_model * x_isz      # out tile, double-buffered
        + 2 * d_model * tf * w_isz      # W1 slice, double-buffered
        + 2 * tf * d_model * w_isz      # W2 slice, double-buffered
        + 2 * 8 * tf * w_isz            # b1 slice (sublane-padded)
        + 2 * 8 * d_model * w_isz       # b2 (sublane-padded)
        + tm * tf * 4                   # h: f32 matmul output
        + tm * tf * w_isz               # h cast to weight dtype
    )
    if not resident:
        buf += tm * d_model * 4         # f32 accumulator scratch
    return buf


def _sanitize_tile_f(d_ff, tile_f):
    """Clamp a user d_ff tile to a multiple of 128 that divides d_ff."""
    tf = int(tile_f)
    if tf >= d_ff:
        return d_ff
    if d_ff % 128 != 0:
        return d_ff  # irregular d_ff: keep a single full block
    tf = max(128, (tf // 128) * 128)
    while d_ff % tf != 0:
        tf -= 128
    return tf


def _choose_tiles(M, d_model, d_ff, x_isz, w_isz, vmem_budget, tile_m, tile_f,
                  is_v5e):
    """Returns (tm, tf, grid_k).  Prefers the weight-resident path."""
    sub = 16 if x_isz < 4 else 8          # sublane alignment (bf16 vs f32)
    m_cap = _round_up(max(M, 1), sub)

    def clamp_tm(t):
        return max(sub, _round_up(min(int(t), m_cap), sub))

    tf_user = _sanitize_tile_f(d_ff, tile_f) if tile_f is not None else None

    # --- 1) weight-resident path: W1/W2 stay in VMEM, single reduction step.
    if tf_user is None or tf_user >= d_ff:
        tm_cands = ([clamp_tm(tile_m)] if tile_m is not None
                    else [clamp_tm(t) for t in (512, 256, 128, 64, 32, 16, 8)])
        for tm in tm_cands:
            if _footprint_bytes(tm, d_ff, d_model, x_isz, w_isz, True) <= vmem_budget:
                return tm, d_ff, 1

    # --- 2) d_ff-tiled (reduction grid) path.
    if tf_user is not None and tf_user < d_ff:
        tf_cands = [tf_user]
    else:
        tf_cands = [t for t in (2048, 1024, 512, 256, 128)
                    if d_ff % t == 0 and t < d_ff]
        if not tf_cands:
            tf_cands = [d_ff]  # irregular d_ff: single full block
    # Per-k arithmetic intensity against streamed weights ~ tm flops/byte:
    # v6e/v7x need a large row tile to stay MXU-bound; v5e is fine at 512.
    tm_top = 512 if is_v5e else 1024
    tm_cands = ([clamp_tm(tile_m)] if tile_m is not None
                else [clamp_tm(t) for t in (tm_top, 512, 256, 128, 64, 32, 16, 8)])
    for tm in tm_cands:
        for tf in tf_cands:
            if _footprint_bytes(tm, tf, d_model, x_isz, w_isz, False) <= vmem_budget:
                gk = d_ff // tf if d_ff % tf == 0 else 1
                return tm, tf, gk
    # Nothing fit the budget estimate: best-effort smallest candidates
    # (vmem_limit is clamped to physical VMEM regardless).
    tm = tm_cands[-1]
    tf = tf_cands[-1]
    gk = d_ff // tf if d_ff % tf == 0 else 1
    return tm, tf, gk


# -----------------------------------------------------------------------------
# Public wrapper
# -----------------------------------------------------------------------------
@functools.partial(jax.jit, static_argnames=("tile_m", "tile_f"))
def positionwise_feed_forward(x, w1, b1, w2, b2, *, tile_m=None, tile_f=None):
    """x: (B, S, d_model).  w1: (d_model, d_ff), b1: (d_ff,),
    w2: (d_ff, d_model), b2: (d_model,).  Returns (B, S, d_model)."""
    B, S, d_model = x.shape
    d_ff = w1.shape[1]
    M = B * S

    x_isz = jnp.dtype(x.dtype).itemsize
    w_isz = jnp.dtype(w1.dtype).itemsize

    vmem_cap, is_v5e = _tpu_vmem_info()
    vmem_budget = int(vmem_cap * 0.85)   # leave headroom for internal scratch

    tm, tf, grid_k = _choose_tiles(
        M, d_model, d_ff, x_isz, w_isz, vmem_budget, tile_m, tile_f, is_v5e
    )
    resident = grid_k == 1

    m_pad = _round_up(M, tm)
    grid_m = m_pad // tm

    x2d = x.reshape(M, d_model)
    if m_pad != M:
        x2d = jnp.pad(x2d, ((0, m_pad - M), (0, 0)))
    b1_2d = b1.reshape(1, d_ff)
    b2_2d = b2.reshape(1, d_model)

    # --- VMEM limit (clamped to physical VMEM) / cost estimate --------------
    fp = _footprint_bytes(tm, tf, d_model, x_isz, w_isz, resident)
    vmem_limit = min(vmem_cap - (2 << 20),
                     max(int(fp * 1.3) + (4 << 20), 32 << 20))
    vmem_limit = int(max(vmem_limit, 16 << 20))

    flops = 4 * m_pad * d_model * d_ff    # two matmuls, 2 flops / MAC
    weight_passes = 1 if resident else grid_m
    bytes_accessed = (
        m_pad * d_model * x_isz * 2                        # read x, write out
        + weight_passes * (w1.size + w2.size) * w_isz      # streamed weights
        + (b1.size + b2.size) * w_isz
    )
    cost = pl.CostEstimate(flops=flops, transcendentals=0,
                           bytes_accessed=bytes_accessed)

    if resident:
        out2d = pl.pallas_call(
            _ffn_kernel_resident,
            out_shape=jax.ShapeDtypeStruct((m_pad, d_model), x.dtype),
            grid_spec=pltpu.PrefetchScalarGridSpec(
                num_scalar_prefetch=0,
                grid=(grid_m,),
                in_specs=[
                    pl.BlockSpec((tm, d_model), lambda i: (i, 0)),     # x tile
                    pl.BlockSpec((d_model, d_ff), lambda i: (0, 0)),   # W1 (resident)
                    pl.BlockSpec((1, d_ff), lambda i: (0, 0)),         # b1 (resident)
                    pl.BlockSpec((d_ff, d_model), lambda i: (0, 0)),   # W2 (resident)
                    pl.BlockSpec((1, d_model), lambda i: (0, 0)),      # b2 (resident)
                ],
                out_specs=pl.BlockSpec((tm, d_model), lambda i: (i, 0)),
            ),
            compiler_params=pltpu.CompilerParams(
                dimension_semantics=("parallel",),
                vmem_limit_bytes=vmem_limit,
            ),
            cost_estimate=cost,
        )(x2d, w1, b1_2d, w2, b2_2d)
    else:
        out2d = pl.pallas_call(
            _ffn_kernel_tiled,
            out_shape=jax.ShapeDtypeStruct((m_pad, d_model), x.dtype),
            grid_spec=pltpu.PrefetchScalarGridSpec(
                num_scalar_prefetch=0,
                grid=(grid_m, grid_k),
                in_specs=[
                    pl.BlockSpec((tm, d_model), lambda i, k: (i, 0)),   # x row tile
                    pl.BlockSpec((d_model, tf), lambda i, k: (0, k)),   # W1 col slice
                    pl.BlockSpec((1, tf), lambda i, k: (0, k)),         # b1 slice
                    pl.BlockSpec((tf, d_model), lambda i, k: (k, 0)),   # W2 row slice
                    pl.BlockSpec((1, d_model), lambda i, k: (0, 0)),    # b2
                ],
                out_specs=pl.BlockSpec((tm, d_model), lambda i, k: (i, 0)),
                scratch_shapes=[pltpu.VMEM((tm, d_model), jnp.float32)],
            ),
            compiler_params=pltpu.CompilerParams(
                dimension_semantics=("parallel", "arbitrary"),
                vmem_limit_bytes=vmem_limit,
            ),
            cost_estimate=cost,
        )(x2d, w1, b1_2d, w2, b2_2d)

    return out2d[:M].reshape(B, S, d_model)


# -----------------------------------------------------------------------------
# Parameter init / reference
# -----------------------------------------------------------------------------
def init_params(key, d_model, d_ff, dtype=jnp.float32):
    """Deterministic init mimicking nn.Linear defaults (uniform +/- 1/sqrt(fan_in)).
    Weights are stored as (in_features, out_features), i.e. already transposed
    relative to PyTorch's (out, in) layout."""
    k1, k2, k3, k4 = jax.random.split(key, 4)
    bound1 = 1.0 / jnp.sqrt(d_model)
    bound2 = 1.0 / jnp.sqrt(d_ff)
    w1 = jax.random.uniform(k1, (d_model, d_ff), dtype, -bound1, bound1)
    b1 = jax.random.uniform(k2, (d_ff,), dtype, -bound1, bound1)
    w2 = jax.random.uniform(k3, (d_ff, d_model), dtype, -bound2, bound2)
    b2 = jax.random.uniform(k4, (d_model,), dtype, -bound2, bound2)
    return w1, b1, w2, b2


def _reference(x, w1, b1, w2, b2):
    h = jnp.maximum(jnp.einsum("bsd,df->bsf", x, w1) + b1, 0.0)
    return jnp.einsum("bsf,fd->bsd", h, w2) + b2


if __name__ == "__main__":
    key = jax.random.PRNGKey(0)
    kx, kp = jax.random.split(key)

    # 1) Small f32 shapes consistent with the module's forward (weight-resident path).
    B, S, d_model, d_ff = 2, 8, 32, 64
    x = jax.random.normal(kx, (B, S, d_model), dtype=jnp.float32)
    w1, b1, w2, b2 = init_params(kp, d_model, d_ff)

    out = jax.block_until_ready(positionwise_feed_forward(x, w1, b1, w2, b2))
    ref = _reference(x, w1, b1, w2, b2)
    assert out.shape == (B, S, d_model)
    assert jnp.allclose(out, ref, atol=1e-5, rtol=1e-5), "mismatch vs reference"

    # 2) Padded-M + d_ff-tiled (reduction grid) path on a non-aligned shape.
    B2, S2, dm2, df2 = 3, 7, 128, 512
    x2 = jax.random.normal(jax.random.PRNGKey(1), (B2, S2, dm2), dtype=jnp.float32)
    p2 = init_params(jax.random.PRNGKey(2), dm2, df2)
    out2 = jax.block_until_ready(
        positionwise_feed_forward(x2, *p2, tile_m=16, tile_f=128)
    )
    ref2 = _reference(x2, *p2)
    assert jnp.allclose(out2, ref2, atol=1e-4, rtol=1e-4), "mismatch (tiled path)"

    # 3) bf16 end-to-end (native-dtype MXU inputs, f32 accumulation),
    #    weight-resident path.
    B3, S3, dm3, df3 = 2, 64, 256, 1024
    x3 = jax.random.normal(jax.random.PRNGKey(3), (B3, S3, dm3), dtype=jnp.float32)
    p3 = init_params(jax.random.PRNGKey(4), dm3, df3)
    x3b = x3.astype(jnp.bfloat16)
    p3b = tuple(p.astype(jnp.bfloat16) for p in p3)
    out3 = jax.block_until_ready(positionwise_feed_forward(x3b, *p3b))
    ref3 = _reference(*(a.astype(jnp.float32) for a in (x3b,) + p3b))
    assert out3.dtype == jnp.bfloat16
    assert jnp.allclose(out3.astype(jnp.float32), ref3, atol=5e-2, rtol=5e-2), (
        "mismatch (bf16 path)"
    )

    print("KERNEL_OK")
</pallas_src>

<mosaic_0001>
module attributes {stable_mosaic.version = 11 : i64} {
  func.func @_ffn_kernel_resident(%arg0: i32, %arg1: memref<16x32xf32, #tpu.memory_space<vmem>>, %arg2: memref<32x64xf32, #tpu.memory_space<vmem>>, %arg3: memref<1x64xf32, #tpu.memory_space<vmem>>, %arg4: memref<64x32xf32, #tpu.memory_space<vmem>>, %arg5: memref<1x32xf32, #tpu.memory_space<vmem>>, %arg6: memref<16x32xf32, #tpu.memory_space<vmem>>) attributes {dimension_semantics = [#tpu.dimension_semantics<parallel>], iteration_bounds = array<i64: 1>, scalar_prefetch = 0 : i64, scratch_operands = 0 : i64, tpu.core_type = #tpu.core_type<tc>, window_params = [{transform_indices = @transform_0, window_bounds = array<i64: 16, 32>}, {pipeline_mode = #tpu.pipeline_mode<synchronous>, transform_indices = @transform_1, window_bounds = array<i64: 32, 64>}, {pipeline_mode = #tpu.pipeline_mode<synchronous>, transform_indices = @transform_2, window_bounds = array<i64: 1, 64>}, {pipeline_mode = #tpu.pipeline_mode<synchronous>, transform_indices = @transform_3, window_bounds = array<i64: 64, 32>}, {pipeline_mode = #tpu.pipeline_mode<synchronous>, transform_indices = @transform_4, window_bounds = array<i64: 1, 32>}, {transform_indices = @transform_5, window_bounds = array<i64: 16, 32>}]} {
    %c0 = arith.constant 0 : index
    %c0_0 = arith.constant 0 : index
    %0 = vector.load %arg1[%c0, %c0_0] : memref<16x32xf32, #tpu.memory_space<vmem>>, vector<16x32xf32>
    %c0_1 = arith.constant 0 : index
    %c0_2 = arith.constant 0 : index
    %1 = vector.load %arg2[%c0_1, %c0_2] : memref<32x64xf32, #tpu.memory_space<vmem>>, vector<32x64xf32>
    %cst = arith.constant dense<0.000000e+00> : vector<16x64xf32>
    %2 = tpu.matmul %0, %1, %cst {dimension_numbers = #tpu.dot_dimension_numbers<[1], [0], [0], [1], [0, 0, 1, 1], [], []>} : vector<16x32xf32>, vector<32x64xf32>, vector<16x64xf32> -> vector<16x64xf32>
    %c0_3 = arith.constant 0 : index
    %c0_4 = arith.constant 0 : index
    %3 = vector.load %arg3[%c0_3, %c0_4] : memref<1x64xf32, #tpu.memory_space<vmem>>, vector<1x64xf32>
    %4 = vector.broadcast %3 : vector<1x64xf32> to vector<16x64xf32>
    %5 = arith.addf %2, %4 : vector<16x64xf32>
    %cst_5 = arith.constant 0.000000e+00 : f32
    %6 = vector.broadcast %cst_5 : f32 to vector<16x64xf32>
    %7 = arith.maximumf %5, %6 : vector<16x64xf32>
    %c0_6 = arith.constant 0 : index
    %c0_7 = arith.constant 0 : index
    %8 = vector.load %arg4[%c0_6, %c0_7] : memref<64x32xf32, #tpu.memory_space<vmem>>, vector<64x32xf32>
    %cst_8 = arith.constant dense<0.000000e+00> : vector<16x32xf32>
    %9 = tpu.matmul %7, %8, %cst_8 {dimension_numbers = #tpu.dot_dimension_numbers<[1], [0], [0], [1], [0, 0, 1, 1], [], []>} : vector<16x64xf32>, vector<64x32xf32>, vector<16x32xf32> -> vector<16x32xf32>
    %c0_9 = arith.constant 0 : index
    %c0_10 = arith.constant 0 : index
    %10 = vector.load %arg5[%c0_9, %c0_10] : memref<1x32xf32, #tpu.memory_space<vmem>>, vector<1x32xf32>
    %11 = vector.broadcast %10 : vector<1x32xf32> to vector<16x32xf32>
    %12 = arith.addf %9, %11 : vector<16x32xf32>
    %c0_11 = arith.constant 0 : index
    %c0_12 = arith.constant 0 : index
    %13 = vector.load %arg6[%c0_11, %c0_12] : memref<16x32xf32, #tpu.memory_space<vmem>>, vector<16x32xf32>
    tpu.vector_store %arg6[%c0_11, %c0_12], %12 {strides = array<i32>} : memref<16x32xf32, #tpu.memory_space<vmem>>, vector<16x32xf32>,
    return
  }
  func.func @transform_0(%arg0: i32) -> (i32, i32) {
    %c0_i32 = arith.constant 0 : i32
    %c0_i32_0 = arith.constant 0 : i32
    return %arg0, %c0_i32 : i32, i32
  }
  func.func @transform_1(%arg0: i32) -> (i32, i32) {
    %c0_i32 = arith.constant 0 : i32
    %c0_i32_0 = arith.constant 0 : i32
    %c0_i32_1 = arith.constant 0 : i32
    return %c0_i32, %c0_i32_0 : i32, i32
  }
  func.func @transform_2(%arg0: i32) -> (i32, i32) {
    %c0_i32 = arith.constant 0 : i32
    %c0_i32_0 = arith.constant 0 : i32
    %c0_i32_1 = arith.constant 0 : i32
    return %c0_i32, %c0_i32_0 : i32, i32
  }
  func.func @transform_3(%arg0: i32) -> (i32, i32) {
    %c0_i32 = arith.constant 0 : i32
    %c0_i32_0 = arith.constant 0 : i32
    %c0_i32_1 = arith.constant 0 : i32
    return %c0_i32, %c0_i32_0 : i32, i32
  }
  func.func @transform_4(%arg0: i32) -> (i32, i32) {
    %c0_i32 = arith.constant 0 : i32
    %c0_i32_0 = arith.constant 0 : i32
    %c0_i32_1 = arith.constant 0 : i32
    return %c0_i32, %c0_i32_0 : i32, i32
  }
  func.func @transform_5(%arg0: i32) -> (i32, i32) {
    %c0_i32 = arith.constant 0 : i32
    %c0_i32_0 = arith.constant 0 : i32
    return %arg0, %c0_i32 : i32, i32
  }
}

</mosaic_0001>

<bundles_post_ra>
// kernel: positionwise_feed_forward.1
= control target key start
LH: loop header
LB: loop body
LE: loop exit
PB: predicated region body
PF: predicated region fallthrough
CT: control target
= control target key end

     0   :  { %vm34_vm0 = vcmask 261120   ;;  %s398_s0 = inlined_call_operand.vmem [shape: f32[16,32], index: 0, kind: input, shape index: {}]   ;;  %s399_s1 = inlined_call_operand.vmem [shape: f32[32,64], index: 1, kind: input, shape index: {}]   ;;  %s400_s2 = inlined_call_operand.vmem [shape: f32[1,64], index: 2, kind: input, shape index: {}]   ;;  %s401_s3 = inlined_call_operand.vmem [shape: f32[64,32], index: 3, kind: input, shape index: {}]   ;;  %s402_s4 = inlined_call_operand.vmem [shape: f32[1,32], index: 4, kind: input, shape index: {}]   ;;  %s403_s5 = inlined_call_operand.hbm [shape: f32[16,32], index: 5, kind: output, shape index: {}]  }
   0x1   :  { %v26_v0 = vld [vmem:[%s399_s1 + $0x18] sm:$0xff]  ;;  %v25_v1 = vld [vmem:[%s399_s1 + $0x10] sm:$0xff]  ;;  %v21_v2 = vld [vmem:[%s398_s0] sm:$0xff] }
   0x2   :  { %255 = vmatprep.subr.mxu0 %v26_v0  ;;  %v24_v3 = vld [vmem:[%s399_s1 + $0x8] sm:$0xff]  ;;  %263 = vmatprep.mubr.msk.f32.mxu0 %vm34_vm0, %v21_v2  ;;  %v125_v4 = vld [vmem:[%s401_s3 + $0x38] sm:$0xff]  ;;  %v124_v5 = vld [vmem:[%s401_s3 + $0x30] sm:$0xff] }
   0x3   :  { %256 = vmatpush3.msra.mxu0 %v26_v0  ;;  %266 = vmatprep.subr.mxu1 %v125_v4 }
   0x4   :  { %257 = vmatprep.subr.mxu0 %v25_v1 }
   0x5   :  { %10 = vsyncpa [#allocation3], 0  ;;  %258 = vmatpush3.msra.mxu0 %v25_v1  ;;  %v23_v6 = vld [vmem:[%s399_s1] sm:$0xff]  ;;  %267 = vmatpush3.msra.mxu1 %v125_v4  ;;  %v123_v7 = vld [vmem:[%s401_s3 + $0x28] sm:$0xff]  ;;  %vm133_vm1 = vcmask 523264  }
   0x6   :  { %259 = vmatprep.subr.mxu0 %v24_v3  ;;  %268 = vmatprep.subr.mxu1 %v124_v5  ;;  %v22_v8 = vld [vmem:[%s398_s0 + $0x8] sm:$0xff]  ;;  %v122_v9 = vld [vmem:[%s401_s3 + $0x20] sm:$0xff]  ;;  %v121_v10 = vld [vmem:[%s401_s3 + $0x18] sm:$0xff] }
   0x7   :  { %260 = vmatpush3.msra.mxu0 %v24_v3  ;;  %269 = vmatpush3.msra.mxu1 %v124_v5  ;;  %v120_v11 = vld [vmem:[%s401_s3 + $0x10] sm:$0xff]  ;;  %v119_v12 = vld [vmem:[%s401_s3 + $0x8] sm:$0xff]  ;;  %v118_v13 = vld [vmem:[%s401_s3] sm:$0xff]  ;;  %s310_s3 = smov [#allocation2]  }
   0x8   :  { %261 = vmatprep.subr.mxu0 %v23_v6  ;;  %270 = vmatprep.subr.mxu1 %v123_v7  ;;  %v233_v14 = vld [vmem:[%s400_s2] ss:$0 sm:$0xff]  ;;  %s222_s23 = sshll.u32 %s310_s3, 4  ;;  %s223_s23 = int_to_ptr.vmem [resolvable:$true] %s222_s23 }
   0x9   :  { %262 = vmatpush3.msra.mxu0 %v23_v6  ;;  %271 = vmatpush3.msra.mxu1 %v123_v7  ;;  %v236_v21 = vld [vmem:[%s402_s4] ss:$0 sm:$0xff]  ;;  %s288_s2 = scalar_lea.vmem %s223_s23, 256  ;;  %p293_p1 = scmp.lt.s32.totalorder %s223_s23, %s223_s23 }
   0xa   :  { %264 = vmatmul.mubr.msk.f32.vlgmr.msra.gmra.mxu0 %vm34_vm0, %v22_v8  ;;  %272 = vmatprep.subr.mxu1 %v122_v9  ;;  %p289_p0 = scmp.ne.s32.totalorder %s223_s23, %s288_s2  ;;  %p294_p2 = scmp.lt.s32.totalorder %s288_s2, %s288_s2 }
   0xb   :  { %273 = vmatpush3.msra.mxu1 %v122_v9 }
   0xc   :  { %274 = vmatprep.subr.mxu1 %v121_v10  ;;  %p295_p3 = por %p294_p2, %p293_p1 }
   0xd   :  { %275 = vmatpush3.msra.mxu1 %v121_v10 }
   0xe   :  { %276 = vmatprep.subr.mxu1 %v120_v11  ;;  %p296_p4 = pnand %p295_p3, %p289_p0 }
   0xf   :  { %277 = vmatpush3.msra.mxu1 %v120_v11 }
  0x10   :  { %278 = vmatprep.subr.mxu1 %v119_v12 }
  0x11   :  { %279 = vmatpush3.msra.mxu1 %v119_v12 }
  0x12   :  { %280 = vmatprep.subr.mxu1 %v118_v13 }
  0x13   :  { %281 = vmatpush3.msra.mxu1 %v118_v13 }
  0xca   :  { %v265_v15 = vpop.f32.mrf.mxu0 }
  0xcb   :  { %v113_v16 = vadd.f32 %v265_v15, %v233_v14 }
  0xcc   :  { %v107_v17 = vpop.f32.mrf.mxu0 }
  0xcd   :  { %v108_v18 = vadd.f32 %v233_v14, %v107_v17  ;;  %v117_v20 = vmax.f32 %v113_v16, 0.0 }
  0xcf   :  { %v116_v19 = vmax.f32 %v108_v18, 0.0 }
  0xd1   :  { %282 = vmatprep.mubr.msk.f32.mxu1 %vm133_vm1, %v116_v19 }
  0xd2   :  { %283 = vmatmul.mubr.msk.f32.vlgmr.msra.gmra.mxu1 %vm133_vm1, %v117_v20 }
 0x192   :  { %v284_v22 = vpop.f32.mrf.mxu1 }
 0x193   :  { %v212_v23 = vadd.f32 %v284_v22, %v236_v21 }
 0x194   :  { %v206_v24 = vpop.f32.mrf.mxu1 }
 0x195   :  { %216 = vst.msk [vmem:[#allocation2 + $0x8] sm:$0xff] %vm34_vm0, %v212_v23  ;;  %v207_v25 = vadd.f32 %v236_v21, %v206_v24 }
 0x197   :  { %215 = vst.msk [vmem:[#allocation2] sm:$0xff] %vm34_vm0, %v207_v25 }
 0x198   :  { %299 = shalt.err (!%p296_p4)
}
 0x199   :  { %s311_s24 = smov 128   ;;  %s312_s4 = smov 8  }
 0x19a   :  { %228 = dma.vmem_to_hbm [thread:$0]  %s223_s23, 256, %s403_s5, [#allocation3], %s311_s24, %s311_s24, %s312_s4  }
 0x19b   :  { %308 = dma.done.wait [#allocation3], 256  }
 0x19c   :  { %309 = vsyncadd [#allocation3], 4294967040 }
 0x19d   :  { %232 = vsyncpa [#allocation3], 1 }

</bundles_post_ra>
